<compile_context>
chip_gen: v5e
topology: v5e:2x2
jax: 0.10.0
libtpu: 0.0.40
codegen_flags: <defaults>
</compile_context>

<pallas_src>
import jax
import jax.numpy as jnp
from jax import lax
from jax.experimental import pallas as pl
from jax.experimental.pallas import tpu as pltpu

_LANE = 128


def _cdiv(a, b):
    return -(-a // b)


def _round_up(v, m):
    return _cdiv(v, m) * m


def _vmem_limit_bytes():
    """~3/4 of physical VMEM: 96 MiB on v5e/v6e, 48 MiB on v7x (fallback 48)."""
    cap = 64 * 1024 * 1024
    try:
        cap = int(pltpu.get_tpu_info().vmem_capacity_bytes)
    except Exception:
        pass
    return min((cap * 3) // 4, 100 * 1024 * 1024)


def _invariant_spec(block_shape, index_map):
    """Grid-invariant input: fetched once; single-buffered when the API allows."""
    if hasattr(pl, "Buffered"):
        try:
            return pl.BlockSpec(block_shape, index_map,
                                pipeline_mode=pl.Buffered(1))
        except TypeError:  # older BlockSpec without pipeline_mode
            pass
    return pl.BlockSpec(block_shape, index_map)


def _choose_groups(b, cin, lane_target=256):
    """Fold batches into lanes up to ~lane_target useful lanes per grid step;
    force >=2 groups when B>1 so the 'parallel' grid feeds both v7x cores."""
    per_group = max(1, lane_target // max(cin, 1))
    g = _cdiv(b, per_group)
    if g == 1 and b > 1:
        g = 2
    bg = _cdiv(b, g)
    return g, bg


# -----------------------------------------------------------------------------
# Fused kernel: Chebyshev recurrence (L_hat resident, T in f32) + per-k
# projection + bias, all in VMEM.  One grid step handles one batch group whose
# channels are folded into the lane axis (Lg lanes, zero-padded to 128k).
# -----------------------------------------------------------------------------
def _make_fused_kernel(k_hops, bg, cin, mxu_dtype):
    def kernel(x_ref, lap_ref, w_ref, b_ref, o_ref):
        n = lap_ref.shape[0]
        lg = x_ref.shape[-1]
        cout_p = o_ref.shape[-1]

        lap = lap_ref[...]                                   # [N, N]       bf16
        bias = b_ref[...]                                    # [1, Cout_p]  f32

        # Row masks selecting each local batch's Cin-slab of the replicated
        # projection weight (VPU select; avoids non-128-aligned lane slices).
        row_ids = lax.broadcasted_iota(jnp.int32, (lg, cout_p), 0)
        masks = [(row_ids >= bl * cin) & (row_ids < (bl + 1) * cin)
                 for bl in range(bg)]

        # Output accumulator lives in the (VMEM) output block; init with bias.
        for bl in range(bg):
            o_ref[bl] = jnp.broadcast_to(bias, (n, cout_p))

        def project(t_mxu, k):
            w_k = w_ref[k]                                   # [Lg, Cout_p] bf16
            for bl in range(bg):
                w_b = jnp.where(masks[bl], w_k, jnp.zeros_like(w_k))
                o_ref[bl] += jnp.dot(t_mxu, w_b,
                                     preferred_element_type=jnp.float32)

        # Chebyshev recurrence: T stored in f32, matmul operands cast to bf16.
        t_km2 = x_ref[0]                                     # [N, Lg] f32
        t_km2_m = t_km2.astype(mxu_dtype)
        project(t_km2_m, 0)
        if k_hops > 1:
            t_km1 = jnp.dot(lap, t_km2_m, preferred_element_type=jnp.float32)
            t_km1_m = t_km1.astype(mxu_dtype)
            project(t_km1_m, 1)
            for k in range(2, k_hops):
                t_k = 2.0 * jnp.dot(lap, t_km1_m,
                                    preferred_element_type=jnp.float32) - t_km2
                t_k_m = t_k.astype(mxu_dtype)
                project(t_k_m, k)
                t_km2, t_km1, t_km1_m = t_km1, t_k, t_k_m

    return kernel


# -----------------------------------------------------------------------------
# Module forward:  out[b] = sum_k T_k(L_hat) @ x[b] @ W[k] + bias
# -----------------------------------------------------------------------------
def spherical_cheb_conv(x, lap_hat, weight, bias, *, lane_target=256,
                        mxu_dtype=jnp.bfloat16):
    """x: [B, N, Cin], lap_hat: [N, N], weight: [K, Cin, Cout], bias: [Cout]."""
    b, n, cin = x.shape
    k_hops, _, cout = weight.shape
    cout_p = _round_up(cout, _LANE)

    g, bg = _choose_groups(b, cin, lane_target)
    bp = g * bg                                   # padded batch count
    lg = _round_up(bg * cin, _LANE)               # folded lanes per group

    vmem_limit = _vmem_limit_bytes()
    need = (2 * n * n * 2                         # L_hat (allow double buffer)
            + 2 * n * lg * 4                      # x group block, double buffer
            + 2 * k_hops * lg * cout_p * 2        # replicated weights
            + 2 * bg * n * cout_p * 4             # output block, double buffer
            + 3 * n * lg * 4 + 2 * n * lg * 2     # f32 T's + bf16 casts
            + 2 * n * cout_p * 4)                 # projection temporaries
    if need > vmem_limit:
        # TODO(synk): streamed / sparse SpMM path for L_hat that does not fit
        # VMEM (row-tiled column-block pipeline or neighbor-index gather).
        raise NotImplementedError(
            f"dense fused path needs ~{need} B of VMEM > limit {vmem_limit} B")

    # ---- layout plumbing (wrapper-side XLA) ---------------------------------
    x_p = jnp.pad(x.astype(jnp.float32), ((0, bp - b), (0, 0), (0, 0)))
    xs = x_p.reshape(g, bg, n, cin).transpose(0, 2, 1, 3).reshape(g, n, bg * cin)
    xs = jnp.pad(xs, ((0, 0), (0, 0), (0, lg - bg * cin)))       # [G, N, Lg] f32

    lap = lap_hat.astype(mxu_dtype)                              # [N, N]    bf16

    # Per-batch *replicated* (not block-diagonal) projection weight: linear in B.
    w_rep = jnp.tile(weight.astype(jnp.float32), (1, bg, 1))     # [K, bg*Cin, Cout]
    w_rep = jnp.pad(w_rep, ((0, 0), (0, lg - bg * cin), (0, cout_p - cout)))
    w_rep = w_rep.astype(mxu_dtype)                              # [K, Lg, Cout_p]

    bias_p = jnp.pad(bias.astype(jnp.float32), (0, cout_p - cout)).reshape(1, cout_p)

    kernel = _make_fused_kernel(k_hops, bg, cin, mxu_dtype)
    out = pl.pallas_call(
        kernel,
        out_shape=jax.ShapeDtypeStruct((bp, n, cout_p), jnp.float32),
        grid_spec=pltpu.PrefetchScalarGridSpec(
            num_scalar_prefetch=0,
            grid=(g,),
            in_specs=[
                pl.BlockSpec((1, n, lg), lambda i: (i, 0, 0)),         # x group
                _invariant_spec((n, n), lambda i: (0, 0)),             # L_hat
                _invariant_spec((k_hops, lg, cout_p), lambda i: (0, 0, 0)),
                _invariant_spec((1, cout_p), lambda i: (0, 0)),        # bias
            ],
            out_specs=pl.BlockSpec((bg, n, cout_p), lambda i: (i, 0, 0)),
        ),
        compiler_params=pltpu.CompilerParams(
            dimension_semantics=("parallel",),
            vmem_limit_bytes=vmem_limit),
    )(xs, lap, w_rep, bias_p)                                    # [Bp, N, Cout_p] f32

    return out[:b, :, :cout]                                     # [B, N, Cout]


# -----------------------------------------------------------------------------
# Pure-JAX reference (f32, HIGHEST matmul precision) for correctness checking.
# -----------------------------------------------------------------------------
def _reference(x, lap_hat, weight, bias):
    hi = jax.lax.Precision.HIGHEST
    k = weight.shape[0]
    lap = lap_hat.astype(jnp.float32)
    ts = [x.astype(jnp.float32)]
    if k > 1:
        ts.append(jnp.einsum("ij,bjc->bic", lap, ts[-1], precision=hi))
    for _ in range(2, k):
        ts.append(2.0 * jnp.einsum("ij,bjc->bic", lap, ts[-1], precision=hi) - ts[-2])
    out = sum(jnp.einsum("bnc,cd->bnd", ts[i], weight[i].astype(jnp.float32),
                         precision=hi) for i in range(k))
    return out + bias.astype(jnp.float32)


# -----------------------------------------------------------------------------
# Graph helpers: ring graph edge list + dense rescaled Laplacian
# (dense equivalent of PyG ChebConv.__norm__ with normalization='sym').
# -----------------------------------------------------------------------------
def _ring_graph(n, offsets=(1, 2)):
    idx = jnp.arange(n)
    rows, cols = [], []
    for d in offsets:
        rows += [idx, idx]
        cols += [(idx + d) % n, (idx - d) % n]
    edge_index = jnp.stack([jnp.concatenate(rows), jnp.concatenate(cols)]).astype(jnp.int32)
    edge_weight = jnp.ones((edge_index.shape[1],), jnp.float32)
    return edge_index, edge_weight


def _rescaled_laplacian(edge_index, edge_weight, num_nodes, lambda_max=2.0):
    a = jnp.zeros((num_nodes, num_nodes), jnp.float32)
    a = a.at[edge_index[0], edge_index[1]].add(edge_weight)
    deg = a.sum(axis=1)
    dinv = jnp.where(deg > 0, 1.0 / jnp.sqrt(deg), 0.0)
    a_norm = a * dinv[:, None] * dinv[None, :]
    l_sym = jnp.eye(num_nodes, dtype=jnp.float32) - a_norm
    return (2.0 / lambda_max) * l_sym - jnp.eye(num_nodes, dtype=jnp.float32)


if __name__ == "__main__":
    B, N, Cin, Cout, K = 2, 64, 8, 16, 3

    key = jax.random.PRNGKey(0)
    kx, kw, kb = jax.random.split(key, 3)
    x = jax.random.normal(kx, (B, N, Cin), dtype=jnp.float32)
    scale = (2.0 / (K * Cin + Cout)) ** 0.5
    weight = scale * jax.random.normal(kw, (K, Cin, Cout), dtype=jnp.float32)
    bias = 0.5 * jax.random.normal(kb, (Cout,), dtype=jnp.float32)

    edge_index, edge_weight = _ring_graph(N)
    lap_hat = _rescaled_laplacian(edge_index, edge_weight, N, lambda_max=2.0)

    conv = jax.jit(spherical_cheb_conv)
    out = jax.block_until_ready(conv(x, lap_hat, weight, bias))
    assert out.shape == (B, N, Cout)

    # Tolerances reflect bf16 MXU operands with f32 accumulation / f32 T storage.
    ref = _reference(x, lap_hat, weight, bias)
    max_abs = float(jnp.max(jnp.abs(out - ref)))
    rel_fro = float(jnp.linalg.norm(out - ref) / (jnp.linalg.norm(ref) + 1e-12))
    assert jnp.allclose(out, ref, atol=5e-2, rtol=5e-2), max_abs
    assert rel_fro < 2e-2, rel_fro

    print("KERNEL_OK")
</pallas_src>

<mosaic_0001>
module attributes {stable_mosaic.version = 11 : i64} {
  func.func @kernel(%arg0: i32, %arg1: memref<1x64x128xf32, #tpu.memory_space<vmem>>, %arg2: memref<64x64xbf16, #tpu.memory_space<vmem>>, %arg3: memref<3x128x128xbf16, #tpu.memory_space<vmem>>, %arg4: memref<1x128xf32, #tpu.memory_space<vmem>>, %arg5: memref<1x64x128xf32, #tpu.memory_space<vmem>>) attributes {dimension_semantics = [#tpu.dimension_semantics<parallel>], iteration_bounds = array<i64: 2>, scalar_prefetch = 0 : i64, scratch_operands = 0 : i64, tpu.core_type = #tpu.core_type<tc>, window_params = [{transform_indices = @transform_0, window_bounds = array<i64: 1, 64, 128>}, {pipeline_mode = #tpu.pipeline_mode<synchronous>, transform_indices = @transform_1, window_bounds = array<i64: 64, 64>}, {pipeline_mode = #tpu.pipeline_mode<synchronous>, transform_indices = @transform_2, window_bounds = array<i64: 3, 128, 128>}, {pipeline_mode = #tpu.pipeline_mode<synchronous>, transform_indices = @transform_3, window_bounds = array<i64: 1, 128>}, {transform_indices = @transform_4, window_bounds = array<i64: 1, 64, 128>}]} {
    %c0 = arith.constant 0 : index
    %c0_0 = arith.constant 0 : index
    %0 = vector.load %arg2[%c0, %c0_0] : memref<64x64xbf16, #tpu.memory_space<vmem>>, vector<64x64xbf16>
    %c0_1 = arith.constant 0 : index
    %c0_2 = arith.constant 0 : index
    %1 = vector.load %arg4[%c0_1, %c0_2] : memref<1x128xf32, #tpu.memory_space<vmem>>, vector<1x128xf32>
    %2 = tpu.iota {dimensions = array<i32: 0>} : vector<128x128xi32>
    %c0_i32 = arith.constant 0 : i32
    %3 = vector.broadcast %c0_i32 : i32 to vector<128x128xi32>
    %4 = arith.cmpi sge, %2, %3 : vector<128x128xi32>
    %c8_i32 = arith.constant 8 : i32
    %5 = vector.broadcast %c8_i32 : i32 to vector<128x128xi32>
    %6 = arith.cmpi slt, %2, %5 : vector<128x128xi32>
    %7 = arith.andi %4, %6 : vector<128x128xi1>
    %8 = vector.shape_cast %1 : vector<1x128xf32> to vector<1x128xf32>
    %9 = vector.broadcast %8 : vector<1x128xf32> to vector<64x128xf32>
    %c0_3 = arith.constant 0 : index
    %c0_4 = arith.constant 0 : index
    %c0_5 = arith.constant 0 : index
    %10 = vector.load %arg5[%c0_3, %c0_4, %c0_5] : memref<1x64x128xf32, #tpu.memory_space<vmem>>, vector<1x64x128xf32>
    %11 = vector.shape_cast %10 : vector<1x64x128xf32> to vector<64x128xf32>
    %12 = vector.shape_cast %9 : vector<64x128xf32> to vector<1x64x128xf32>
    tpu.vector_store %arg5[%c0_3, %c0_4, %c0_5], %12 {strides = array<i32>} : memref<1x64x128xf32, #tpu.memory_space<vmem>>, vector<1x64x128xf32>,
    %c0_6 = arith.constant 0 : index
    %c0_7 = arith.constant 0 : index
    %c0_8 = arith.constant 0 : index
    %13 = vector.load %arg1[%c0_6, %c0_7, %c0_8] : memref<1x64x128xf32, #tpu.memory_space<vmem>>, vector<1x64x128xf32>
    %14 = vector.shape_cast %13 : vector<1x64x128xf32> to vector<64x128xf32>
    %15 = arith.truncf %14 : vector<64x128xf32> to vector<64x128xbf16>
    %c0_9 = arith.constant 0 : index
    %c0_10 = arith.constant 0 : index
    %c0_11 = arith.constant 0 : index
    %16 = vector.load %arg3[%c0_9, %c0_10, %c0_11] : memref<3x128x128xbf16, #tpu.memory_space<vmem>>, vector<1x128x128xbf16>
    %17 = vector.shape_cast %16 : vector<1x128x128xbf16> to vector<128x128xbf16>
    %cst = arith.constant 0.000000e+00 : bf16
    %18 = vector.broadcast %cst : bf16 to vector<128x128xbf16>
    %19 = arith.select %7, %17, %18 : vector<128x128xi1>, vector<128x128xbf16>
    %c0_12 = arith.constant 0 : index
    %c0_13 = arith.constant 0 : index
    %c0_14 = arith.constant 0 : index
    %20 = vector.load %arg5[%c0_12, %c0_13, %c0_14] : memref<1x64x128xf32, #tpu.memory_space<vmem>>, vector<1x64x128xf32>
    %21 = vector.shape_cast %20 : vector<1x64x128xf32> to vector<64x128xf32>
    %cst_15 = arith.constant dense<0.000000e+00> : vector<64x128xf32>
    %22 = tpu.matmul %15, %19, %cst_15 {dimension_numbers = #tpu.dot_dimension_numbers<[1], [0], [0], [1], [0, 0, 1, 1], [], []>} : vector<64x128xbf16>, vector<128x128xbf16>, vector<64x128xf32> -> vector<64x128xf32>
    %23 = arith.addf %21, %22 : vector<64x128xf32>
    %c0_16 = arith.constant 0 : index
    %c0_17 = arith.constant 0 : index
    %c0_18 = arith.constant 0 : index
    %24 = vector.load %arg5[%c0_16, %c0_17, %c0_18] : memref<1x64x128xf32, #tpu.memory_space<vmem>>, vector<1x64x128xf32>
    %25 = vector.shape_cast %24 : vector<1x64x128xf32> to vector<64x128xf32>
    %26 = vector.shape_cast %23 : vector<64x128xf32> to vector<1x64x128xf32>
    tpu.vector_store %arg5[%c0_16, %c0_17, %c0_18], %26 {strides = array<i32>} : memref<1x64x128xf32, #tpu.memory_space<vmem>>, vector<1x64x128xf32>,
    %cst_19 = arith.constant dense<0.000000e+00> : vector<64x128xf32>
    %27 = tpu.matmul %0, %15, %cst_19 {dimension_numbers = #tpu.dot_dimension_numbers<[1], [0], [0], [1], [0, 0, 1, 1], [], []>} : vector<64x64xbf16>, vector<64x128xbf16>, vector<64x128xf32> -> vector<64x128xf32>
    %28 = arith.truncf %27 : vector<64x128xf32> to vector<64x128xbf16>
    %c1 = arith.constant 1 : index
    %c0_20 = arith.constant 0 : index
    %c0_21 = arith.constant 0 : index
    %29 = vector.load %arg3[%c1, %c0_20, %c0_21] : memref<3x128x128xbf16, #tpu.memory_space<vmem>>, vector<1x128x128xbf16>
    %30 = vector.shape_cast %29 : vector<1x128x128xbf16> to vector<128x128xbf16>
    %cst_22 = arith.constant 0.000000e+00 : bf16
    %31 = vector.broadcast %cst_22 : bf16 to vector<128x128xbf16>
    %32 = arith.select %7, %30, %31 : vector<128x128xi1>, vector<128x128xbf16>
    %c0_23 = arith.constant 0 : index
    %c0_24 = arith.constant 0 : index
    %c0_25 = arith.constant 0 : index
    %33 = vector.load %arg5[%c0_23, %c0_24, %c0_25] : memref<1x64x128xf32, #tpu.memory_space<vmem>>, vector<1x64x128xf32>
    %34 = vector.shape_cast %33 : vector<1x64x128xf32> to vector<64x128xf32>
    %cst_26 = arith.constant dense<0.000000e+00> : vector<64x128xf32>
    %35 = tpu.matmul %28, %32, %cst_26 {dimension_numbers = #tpu.dot_dimension_numbers<[1], [0], [0], [1], [0, 0, 1, 1], [], []>} : vector<64x128xbf16>, vector<128x128xbf16>, vector<64x128xf32> -> vector<64x128xf32>
    %36 = arith.addf %34, %35 : vector<64x128xf32>
    %c0_27 = arith.constant 0 : index
    %c0_28 = arith.constant 0 : index
    %c0_29 = arith.constant 0 : index
    %37 = vector.load %arg5[%c0_27, %c0_28, %c0_29] : memref<1x64x128xf32, #tpu.memory_space<vmem>>, vector<1x64x128xf32>
    %38 = vector.shape_cast %37 : vector<1x64x128xf32> to vector<64x128xf32>
    %39 = vector.shape_cast %36 : vector<64x128xf32> to vector<1x64x128xf32>
    tpu.vector_store %arg5[%c0_27, %c0_28, %c0_29], %39 {strides = array<i32>} : memref<1x64x128xf32, #tpu.memory_space<vmem>>, vector<1x64x128xf32>,
    %cst_30 = arith.constant dense<0.000000e+00> : vector<64x128xf32>
    %40 = tpu.matmul %0, %28, %cst_30 {dimension_numbers = #tpu.dot_dimension_numbers<[1], [0], [0], [1], [0, 0, 1, 1], [], []>} : vector<64x64xbf16>, vector<64x128xbf16>, vector<64x128xf32> -> vector<64x128xf32>
    %cst_31 = arith.constant 2.000000e+00 : f32
    %41 = vector.broadcast %cst_31 : f32 to vector<64x128xf32>
    %42 = arith.mulf %41, %40 : vector<64x128xf32>
    %43 = arith.subf %42, %14 : vector<64x128xf32>
    %44 = arith.truncf %43 : vector<64x128xf32> to vector<64x128xbf16>
    %c2 = arith.constant 2 : index
    %c0_32 = arith.constant 0 : index
    %c0_33 = arith.constant 0 : index
    %45 = vector.load %arg3[%c2, %c0_32, %c0_33] : memref<3x128x128xbf16, #tpu.memory_space<vmem>>, vector<1x128x128xbf16>
    %46 = vector.shape_cast %45 : vector<1x128x128xbf16> to vector<128x128xbf16>
    %cst_34 = arith.constant 0.000000e+00 : bf16
    %47 = vector.broadcast %cst_34 : bf16 to vector<128x128xbf16>
    %48 = arith.select %7, %46, %47 : vector<128x128xi1>, vector<128x128xbf16>
    %c0_35 = arith.constant 0 : index
    %c0_36 = arith.constant 0 : index
    %c0_37 = arith.constant 0 : index
    %49 = vector.load %arg5[%c0_35, %c0_36, %c0_37] : memref<1x64x128xf32, #tpu.memory_space<vmem>>, vector<1x64x128xf32>
    %50 = vector.shape_cast %49 : vector<1x64x128xf32> to vector<64x128xf32>
    %cst_38 = arith.constant dense<0.000000e+00> : vector<64x128xf32>
    %51 = tpu.matmul %44, %48, %cst_38 {dimension_numbers = #tpu.dot_dimension_numbers<[1], [0], [0], [1], [0, 0, 1, 1], [], []>} : vector<64x128xbf16>, vector<128x128xbf16>, vector<64x128xf32> -> vector<64x128xf32>
    %52 = arith.addf %50, %51 : vector<64x128xf32>
    %c0_39 = arith.constant 0 : index
    %c0_40 = arith.constant 0 : index
    %c0_41 = arith.constant 0 : index
    %53 = vector.load %arg5[%c0_39, %c0_40, %c0_41] : memref<1x64x128xf32, #tpu.memory_space<vmem>>, vector<1x64x128xf32>
    %54 = vector.shape_cast %53 : vector<1x64x128xf32> to vector<64x128xf32>
    %55 = vector.shape_cast %52 : vector<64x128xf32> to vector<1x64x128xf32>
    tpu.vector_store %arg5[%c0_39, %c0_40, %c0_41], %55 {strides = array<i32>} : memref<1x64x128xf32, #tpu.memory_space<vmem>>, vector<1x64x128xf32>,
    return
  }
  func.func @transform_0(%arg0: i32) -> (i32, i32, i32) {
    %c0_i32 = arith.constant 0 : i32
    %c0_i32_0 = arith.constant 0 : i32
    %c0_i32_1 = arith.constant 0 : i32
    return %arg0, %c0_i32, %c0_i32_0 : i32, i32, i32
  }
  func.func @transform_1(%arg0: i32) -> (i32, i32) {
    %c0_i32 = arith.constant 0 : i32
    %c0_i32_0 = arith.constant 0 : i32
    %c0_i32_1 = arith.constant 0 : i32
    return %c0_i32, %c0_i32_0 : i32, i32
  }
  func.func @transform_2(%arg0: i32) -> (i32, i32, i32) {
    %c0_i32 = arith.constant 0 : i32
    %c0_i32_0 = arith.constant 0 : i32
    %c0_i32_1 = arith.constant 0 : i32
    %c0_i32_2 = arith.constant 0 : i32
    return %c0_i32, %c0_i32_0, %c0_i32_1 : i32, i32, i32
  }
  func.func @transform_3(%arg0: i32) -> (i32, i32) {
    %c0_i32 = arith.constant 0 : i32
    %c0_i32_0 = arith.constant 0 : i32
    %c0_i32_1 = arith.constant 0 : i32
    return %c0_i32, %c0_i32_0 : i32, i32
  }
  func.func @transform_4(%arg0: i32) -> (i32, i32, i32) {
    %c0_i32 = arith.constant 0 : i32
    %c0_i32_0 = arith.constant 0 : i32
    %c0_i32_1 = arith.constant 0 : i32
    return %arg0, %c0_i32, %c0_i32_0 : i32, i32, i32
  }
}

</mosaic_0001>

<bundles_post_ra>
// kernel: spherical_cheb_conv.1
= control target key start
LH: loop header
LB: loop body
LE: loop exit
PB: predicated region body
PF: predicated region fallthrough
CT: control target
= control target key end

     0   :  { %s1006_s15 = smov 0   ;;  %s1389_s0 = inlined_call_operand.vmem [shape: f32[2,64,128], index: 0, kind: input, shape index: {}]   ;;  %s1390_s1 = inlined_call_operand.vmem [shape: bf16[64,64], index: 1, kind: input, shape index: {}]   ;;  %s1391_s2 = inlined_call_operand.vmem [shape: bf16[3,128,128], index: 2, kind: input, shape index: {}]   ;;  %s1392_s3 = inlined_call_operand.vmem [shape: f32[1,128], index: 3, kind: input, shape index: {}]   ;;  %s1393_s4 = inlined_call_operand.vmem [shape: f32[2,64,128], index: 4, kind: output, shape index: {}]  }
   0x1 LB: > { %s883_s16 = sadd.s32 4294967295, %s977_s15   ;;  %p887_p0 = scmp.ge.s32.totalorder %s977_s15, 1  ;;  %s977_s15 = sphi %s1006_s15, %s14_s15  }
   0x2   : > { %p162_p1 = scmp.lt.s32.totalorder %s977_s15, 3 }
   0x4   : > { %p163_p2 = pnand %p887_p0, %p162_p1 }
   0x5   : > { %p188_p3 = scmp.lt.s32.totalorder (!%p163_p2), %s883_s16, 1 }
   0x6   : > { %166 = sbr.rel (%p163_p2) target bundleno = 536 (0x218), region = 36 }
   0xb   : > { %s1399_s16 = smov (!%p188_p3, %s883_s16), 1  ;;  %v310_v8 = vld [vmem:[%s1391_s2 + $0x38] sm:$0xf]  ;;  %v311_v9 = vld [vmem:[%s1391_s2 + $0x3c] sm:$0xf]  ;;  %vm979_vm0 = vmmov 0  }
   0xc   : > { %s950_s17 = sshll.u32 %s1399_s16, 6  ;;  %vm1058_vm1 = vmpackc.low %vm979_vm0, %vm979_vm0  ;;  %v308_v14 = vld [vmem:[%s1391_s2 + $0x30] sm:$0xf]  ;;  %v309_v15 = vld [vmem:[%s1391_s2 + $0x34] sm:$0xf]  ;;  %vm465_vm2 = vcmask 523264  }
   0xd   : > { %s1022_s20 = scalar_lea.vmem %s1389_s0, %s950_s17  ;;  %v342_v12 = vsel %vm1058_vm1, %v310_v8, 0  ;;  %v343_v13 = vsel %vm1058_vm1, %v311_v9, 0  ;;  %v340_v18 = vsel %vm1058_vm1, %v308_v14, 0  ;;  %v341_v19 = vsel %vm1058_vm1, %v309_v15, 0  ;;  %v926_v20 = vld [vmem:[%s1391_s2 + $0x78] sm:$0xf]  ;;  %s1376_s11 = scalar_lea.vmem %s1393_s4, %s950_s17 }
   0xe   : > { %v1025_v0 = vld [vmem:[%s1022_s20 + $0x30] sm:$0xff]  ;;  %v1028_v1 = vld [vmem:[%s1022_s20 + $0x38] sm:$0xff]  ;;  %v1031_v2 = vld [vmem:[%s1022_s20 + $0x20] sm:$0xff]  ;;  %v382_v16 = vunpack.c.l.b16 %v342_v12  ;;  %v383_v17 = vunpack.c.l.b16 %v343_v13  ;;  %v380_v23 = vunpack.c.l.b16 %v340_v18  ;;  %v381_v24 = vunpack.c.l.b16 %v341_v19 }
   0xf   : > { %v1035_v3 = vpack.c.bf16 %v1028_v1, %v1025_v0  ;;  %v1038_v4 = vld [vmem:[%s1022_s20 + $0x28] sm:$0xff]  ;;  %v1041_v5 = vld [vmem:[%s1022_s20 + $0x10] sm:$0xff]  ;;  %v1044_v6 = vld [vmem:[%s1022_s20 + $0x18] sm:$0xff]  ;;  %v542_v25 = vsel %vm1058_vm1, %v926_v20, 0  ;;  %vm980_vm3 = vmmov 1  }
  0x10   : > { %v1050_v7 = vpack.c.bf16 %v1038_v4, %v1031_v2  ;;  %v1064_v11 = vpack.c.bf16 %v1044_v6, %v1041_v5  ;;  %v927_v21 = vld [vmem:[%s1391_s2 + $0x7c] sm:$0xf]  ;;  %v1087_v22 = vld [vmem:[%s1022_s20] sm:$0xff]  ;;  %v306_v27 = vld [vmem:[%s1391_s2 + $0x28] sm:$0xf]  ;;  %v391_v30 = vpack.c.b16 %v383_v17, %v382_v16  ;;  %v582_v31 = vunpack.c.l.b16 %v542_v25 }
  0x11   : > { %482 = vmatpush.bf16.msra.mxu1 %v1035_v3  ;;  %956 = vmatpush.bf16.msra.mxu3 %v1035_v3  ;;  %v543_v26 = vsel %vm1058_vm1, %v927_v21, 0  ;;  %v307_v28 = vld [vmem:[%s1391_s2 + $0x2c] sm:$0xf]  ;;  %v338_v33 = vsel %vm1058_vm1, %v306_v27, 0  ;;  %v924_v34 = vld [vmem:[%s1391_s2 + $0x70] sm:$0xf]  ;;  %v390_v36 = vpack.c.b16 %v381_v24, %v380_v23  ;;  %vm1250_vm4 = vmpackc.low %vm980_vm3, %vm980_vm3 }
  0x12   : > { %v1102_v29 = vld [vmem:[%s1022_s20 + $0x8] sm:$0xff]  ;;  %v583_v32 = vunpack.c.l.b16 %v543_v26  ;;  %v925_v35 = vld [vmem:[%s1391_s2 + $0x74] sm:$0xf]  ;;  %v339_v37 = vsel %vm1058_vm1, %v307_v28, 0  ;;  %v378_v38 = vunpack.c.l.b16 %v338_v33  ;;  %v540_v39 = vsel %vm1058_vm1, %v924_v34, 0  ;;  %400 = vmatpush.bf16.msra.mxu0 %v391_v30  ;;  %v1159_v63 = vld [vmem:[%s1390_s1] sm:$0xff] }
  0x13   : > { %v304_v40 = vld [vmem:[%s1391_s2 + $0x20] sm:$0xf]  ;;  %v305_v41 = vld [vmem:[%s1391_s2 + $0x24] sm:$0xf]  ;;  %v379_v43 = vunpack.c.l.b16 %v339_v37  ;;  %v541_v44 = vsel %vm1058_vm1, %v925_v35, 0  ;;  %v580_v45 = vunpack.c.l.b16 %v540_v39  ;;  %v1143_v53 = vpack.c.bf16 %v1102_v29, %v1087_v22  ;;  %v1164_v8 = vld [vmem:[%s1390_s1 + $0x10] sm:$0xff] }
  0x14   : > { %v591_v42 = vpack.c.b16 %v583_v32, %v582_v31  ;;  %v922_v46 = vld [vmem:[%s1391_s2 + $0x68] sm:$0xf]  ;;  %v923_v47 = vld [vmem:[%s1391_s2 + $0x6c] sm:$0xf]  ;;  %v581_v48 = vunpack.c.l.b16 %v541_v44  ;;  %v336_v49 = vsel %vm1058_vm1, %v304_v40, 0  ;;  %v337_v50 = vsel %vm1058_vm1, %v305_v41, 0 }
  0x15   : > { %483 = vmatpush.bf16.msra.mxu1 %v1050_v7  ;;  %957 = vmatpush.bf16.msra.mxu3 %v1050_v7  ;;  %v538_v51 = vsel %vm1058_vm1, %v922_v46, 0  ;;  %v302_v52 = vld [vmem:[%s1391_s2 + $0x18] sm:$0xf]  ;;  %v376_v54 = vunpack.c.l.b16 %v336_v49  ;;  %v539_v55 = vsel %vm1058_vm1, %v923_v47, 0  ;;  %v303_v56 = vld [vmem:[%s1391_s2 + $0x1c] sm:$0xf]  ;;  %v377_v59 = vunpack.c.l.b16 %v337_v50 }
  0x16   : > { %v920_v57 = vld [vmem:[%s1391_s2 + $0x60] sm:$0xf]  ;;  %600 = vmatpush.bf16.msra.mxu2 %v591_v42  ;;  %v590_v58 = vpack.c.b16 %v581_v48, %v580_v45  ;;  %v578_v60 = vunpack.c.l.b16 %v538_v51  ;;  %v579_v61 = vunpack.c.l.b16 %v539_v55  ;;  %v921_v62 = vld [vmem:[%s1391_s2 + $0x64] sm:$0xf]  ;;  %401 = vmatpush.bf16.msra.mxu0 %v390_v36  ;;  %v389_v9 = vpack.c.b16 %v379_v43, %v378_v38  ;;  %v918_v16 = vld [vmem:[%s1391_s2 + $0x58] sm:$0xf] }
  0x17   : > { %v334_v12 = vsel %vm1058_vm1, %v302_v52, 0  ;;  %v536_v13 = vsel %vm1058_vm1, %v920_v57, 0  ;;  %v335_v14 = vsel %vm1058_vm1, %v303_v56, 0  ;;  %v537_v15 = vsel %vm1058_vm1, %v921_v62, 0  ;;  %v919_v17 = vld [vmem:[%s1391_s2 + $0x5c] sm:$0xf] }
  0x18   : > { %v300_v18 = vld [vmem:[%s1391_s2 + $0x10] sm:$0xf]  ;;  %v301_v19 = vld [vmem:[%s1391_s2 + $0x14] sm:$0xf]  ;;  %v388_v20 = vpack.c.b16 %v377_v59, %v376_v54  ;;  %v589_v21 = vpack.c.b16 %v579_v61, %v578_v60  ;;  %v576_v23 = vunpack.c.l.b16 %v536_v13  ;;  %v577_v24 = vunpack.c.l.b16 %v537_v15  ;;  %v298_v32 = vld [vmem:[%s1391_s2 + $0x8] sm:$0xf] }
  0x19   : > { %484 = vmatpush.bf16.msra.mxu1 %v1064_v11  ;;  %958 = vmatpush.bf16.msra.mxu3 %v1064_v11  ;;  %v374_v25 = vunpack.c.l.b16 %v334_v12  ;;  %v375_v26 = vunpack.c.l.b16 %v335_v14  ;;  %v534_v27 = vsel %vm1058_vm1, %v918_v16, 0  ;;  %v535_v28 = vsel %vm1058_vm1, %v919_v17, 0  ;;  %v299_v33 = vld [vmem:[%s1391_s2 + $0xc] sm:$0xf]  ;;  %v1218_v48 = vld [vmem:[%s1390_s1 + $0x18] sm:$0xff] }
  0x1a   : > { %601 = vmatpush.bf16.msra.mxu2 %v590_v58  ;;  %402 = vmatpush.bf16.msra.mxu0 %v389_v9  ;;  %v332_v30 = vsel %vm1058_vm1, %v300_v18, 0  ;;  %v333_v31 = vsel %vm1058_vm1, %v301_v19, 0  ;;  %v588_v34 = vpack.c.b16 %v577_v24, %v576_v23  ;;  %v574_v35 = vunpack.c.l.b16 %v534_v27  ;;  %v1213_v47 = vld [vmem:[%s1390_s1 + $0x8] sm:$0xff]  ;;  %v916_v49 = vld [vmem:[%s1391_s2 + $0x50] sm:$0xf] }
  0x1b   : > { %v575_v36 = vunpack.c.l.b16 %v535_v28  ;;  %v387_v37 = vpack.c.b16 %v375_v26, %v374_v25  ;;  %v372_v38 = vunpack.c.l.b16 %v332_v30  ;;  %v373_v39 = vunpack.c.l.b16 %v333_v31  ;;  %v917_v50 = vld [vmem:[%s1391_s2 + $0x54] sm:$0xf]  ;;  %v914_v57 = vld [vmem:[%s1391_s2 + $0x48] sm:$0xf]  ;;  %v915_v58 = vld [vmem:[%s1391_s2 + $0x4c] sm:$0xf] }
  0x1c   : > { %v330_v40 = vsel %vm1058_vm1, %v298_v32, 0  ;;  %v331_v41 = vsel %vm1058_vm1, %v299_v33, 0  ;;  %v532_v51 = vsel %vm1058_vm1, %v916_v49, 0  ;;  %v533_v52 = vsel %vm1058_vm1, %v917_v50, 0  ;;  %v296_v61 = vld [vmem:[%s1391_s2] sm:$0xf] }
  0x1d   : > { %485 = vmatpush.bf16.msra.mxu1 %v1143_v53  ;;  %959 = vmatpush.bf16.msra.mxu3 %v1143_v53  ;;  %v587_v42 = vpack.c.b16 %v575_v36, %v574_v35  ;;  %v386_v43 = vpack.c.b16 %v373_v39, %v372_v38  ;;  %v370_v44 = vunpack.c.l.b16 %v330_v40  ;;  %v371_v45 = vunpack.c.l.b16 %v331_v41  ;;  %v297_v62 = vld [vmem:[%s1391_s2 + $0x4] sm:$0xf]  ;;  %v912_v18 = vld [vmem:[%s1391_s2 + $0x40] sm:$0xf]  ;;  %v942_v49 = vld [vmem:[%s1391_s2 + $0xa8] sm:$0xf] }
  0x1e   : > { %602 = vmatpush.bf16.msra.mxu2 %v589_v21  ;;  %403 = vmatpush.bf16.msra.mxu0 %v388_v20  ;;  %v572_v54 = vunpack.c.l.b16 %v532_v51  ;;  %v573_v55 = vunpack.c.l.b16 %v533_v52  ;;  %v530_v59 = vsel %vm1058_vm1, %v914_v57, 0  ;;  %v531_v60 = vsel %vm1058_vm1, %v915_v58, 0  ;;  %v913_v19 = vld [vmem:[%s1391_s2 + $0x44] sm:$0xf]  ;;  %v943_v50 = vld [vmem:[%s1391_s2 + $0xac] sm:$0xf] }
  0x1f   : > { %v385_v46 = vpack.c.b16 %v371_v45, %v370_v44  ;;  %v570_v9 = vunpack.c.l.b16 %v530_v59  ;;  %v571_v12 = vunpack.c.l.b16 %v531_v60  ;;  %v329_v14 = vsel %vm1058_vm1, %v297_v62, 0  ;;  %v940_v57 = vld [vmem:[%s1391_s2 + $0xa0] sm:$0xf]  ;;  %v941_v58 = vld [vmem:[%s1391_s2 + $0xa4] sm:$0xf] }
  0x20   : > { %908 = vmatmul.msk.bf16.vlgmr.msra.gmra.mxu1 %vm465_vm2, %v1159_v63  ;;  %910 = vmatmul.msk.bf16.vlgmr.msra.gmra.mxu3 %vm465_vm2, %v1164_v8  ;;  %v586_v56 = vpack.c.b16 %v573_v55, %v572_v54  ;;  %v328_v15 = vsel %vm1250_vm4, %v296_v61, 0  ;;  %v369_v16 = vunpack.c.l.b16 %v329_v14  ;;  %v528_v21 = vsel %vm1250_vm4, %v912_v18, 0  ;;  %v939_v14 = vld [vmem:[%s1391_s2 + $0x9c] sm:$0xf] }
  0x21   : > { %v585_v17 = vpack.c.b16 %v571_v12, %v570_v9  ;;  %v368_v20 = vunpack.c.l.b16 %v328_v15  ;;  %v529_v23 = vsel %vm1058_vm1, %v913_v19, 0  ;;  %v568_v24 = vunpack.c.l.b16 %v528_v21  ;;  %v938_v12 = vld [vmem:[%s1391_s2 + $0x98] sm:$0xf]  ;;  %v937_v21 = vld [vmem:[%s1391_s2 + $0x94] sm:$0xf] }
  0x22   : > { %603 = vmatpush.bf16.msra.mxu2 %v588_v34  ;;  %404 = vmatpush.bf16.msra.mxu0 %v387_v37  ;;  %v569_v25 = vunpack.c.l.b16 %v529_v23  ;;  %v721_v51 = vsel %vm1058_vm1, %v942_v49, 0  ;;  %v722_v52 = vsel %vm1058_vm1, %v943_v50, 0  ;;  %v719_v59 = vsel %vm1058_vm1, %v940_v57, 0 }
  0x23   : > { %v384_v26 = vpack.c.b16 %v369_v16, %v368_v20  ;;  %v761_v54 = vunpack.c.l.b16 %v721_v51  ;;  %v762_v55 = vunpack.c.l.b16 %v722_v52  ;;  %v720_v60 = vsel %vm1058_vm1, %v941_v58, 0  ;;  %v936_v20 = vld [vmem:[%s1391_s2 + $0x90] sm:$0xf] }
  0x24   : > { %v584_v27 = vpack.c.b16 %v569_v25, %v568_v24  ;;  %v759_v61 = vunpack.c.l.b16 %v719_v59  ;;  %v760_v62 = vunpack.c.l.b16 %v720_v60  ;;  %v717_v15 = vsel %vm1058_vm1, %v938_v12, 0 }
  0x25   : > { %v718_v16 = vsel %vm1058_vm1, %v939_v14, 0  ;;  %v715_v23 = vsel %vm1058_vm1, %v936_v20, 0  ;;  %v716_v24 = vsel %vm1058_vm1, %v937_v21, 0 }
  0x26   : > { %604 = vmatpush.bf16.msra.mxu2 %v587_v42  ;;  %405 = vmatpush.bf16.msra.mxu0 %v386_v43  ;;  %v944_v42 = vld [vmem:[%s1391_s2 + $0xb0] sm:$0xf]  ;;  %v945_v43 = vld [vmem:[%s1391_s2 + $0xb4] sm:$0xf]  ;;  %v771_v9 = vpack.c.b16 %v760_v62, %v759_v61  ;;  %v758_v18 = vunpack.c.l.b16 %v718_v16  ;;  %v755_v25 = vunpack.c.l.b16 %v715_v23 }
  0x27   : > { %v723_v44 = vsel %vm1058_vm1, %v944_v42, 0  ;;  %v724_v45 = vsel %vm1058_vm1, %v945_v43, 0 }
  0x2a   : > { %406 = vmatpush.bf16.msra.mxu0 %v385_v46  ;;  %605 = vmatpush.bf16.msra.mxu2 %v586_v56  ;;  %v763_v46 = vunpack.c.l.b16 %v723_v44  ;;  %v772_v56 = vpack.c.b16 %v762_v55, %v761_v54 }
  0x2e   : > { %606 = vmatpush.bf16.msra.mxu2 %v585_v17  ;;  %407 = vmatpush.bf16.msra.mxu0 %v384_v26  ;;  %v757_v17 = vunpack.c.l.b16 %v717_v15  ;;  %v756_v26 = vunpack.c.l.b16 %v716_v24 }
  0x30   : > { %909 = vmatmul.msk.bf16.gmra.mxu1 %vm465_vm2, %v1213_v47  ;;  %911 = vmatmul.msk.bf16.gmra.mxu3 %vm465_vm2, %v1218_v48  ;;  %v770_v19 = vpack.c.b16 %v758_v18, %v757_v17 }
  0x31   : > { %408 = vmatmul.bf16.vlgmr.msra.gmra.mxu0 %v1143_v53 }
  0x32   : > { %607 = vmatpush.bf16.msra.mxu2 %v584_v27  ;;  %v769_v27 = vpack.c.b16 %v756_v26, %v755_v25 }
  0x41   : > { %413 = vmatmul.bf16.gmra.mxu0 %v1064_v11 }
  0x51   : > { %418 = vmatmul.bf16.gmra.mxu0 %v1050_v7  ;;  %v947_v7 = vld [vmem:[%s1391_s2 + $0xbc] sm:$0xf] }
  0x61   : > { %423 = vmatmul.bf16.gmra.mxu0 %v1035_v3  ;;  %v946_v3 = vld [vmem:[%s1391_s2 + $0xb8] sm:$0xf] }
  0x62   : > { %v725_v11 = vsel %vm1058_vm1, %v946_v3, 0 }
  0x63   : > { %v765_v40 = vunpack.c.l.b16 %v725_v11 }
  0x9d   : > { %v487_v28 = vpop.f32.mrf.mxu1 }
  0xa3   : > { %v497_v30 = vpop.f32.mrf.mxu3 }
  0xa5   : > { %v489_v31 = vpop.f32.mrf.mxu1 }
  0xa6   : > { %v507_v32 = vpack.c.bf16 %v489_v31, %v487_v28  ;;  %v934_v28 = vld [vmem:[%s1391_s2 + $0x88] sm:$0xf] }
  0xa7   : > { %v713_v31 = vsel %vm1058_vm1, %v934_v28, 0 }
  0xa8   : > { %608 = vmatmul.bf16.vlgmr.msra.gmra.mxu2 %v507_v32 }
  0xab   : > { %v499_v33 = vpop.f32.mrf.mxu3 }
  0xac   : > { %v509_v53 = vpack.c.bf16 %v499_v33, %v497_v30  ;;  %v935_v30 = vld [vmem:[%s1391_s2 + $0x8c] sm:$0xf]  ;;  %v753_v33 = vunpack.c.l.b16 %v713_v31 }
  0xad   : > { %v492_v34 = vpop.f32.mrf.mxu1 }
  0xae   : > { %v409_v60 = vpop.f32.mrf.mxu0 }
  0xb3   : > { %v502_v35 = vpop.f32.mrf.mxu3 }
  0xb5   : > { %v494_v36 = vpop.f32.mrf.mxu1 }
  0xb6   : > { %v508_v37 = vpack.c.bf16 %v494_v36, %v492_v34  ;;  %v932_v36 = vld [vmem:[%s1391_s2 + $0x80] sm:$0xf]  ;;  %v411_v62 = vpop.f32.mrf.mxu0 }
  0xb8   : > { %613 = vmatmul.bf16.gmra.mxu2 %v508_v37 }
  0xbb   : > { %v504_v38 = vpop.f32.mrf.mxu3 }
  0xbc   : > { %v510_v39 = vpack.c.bf16 %v504_v38, %v502_v35  ;;  %v711_v38 = vsel %vm1250_vm4, %v932_v36, 0 }
  0xbe   : > { %649 = vmatpush.bf16.msrb.mxu3 %v510_v39  ;;  %v414_v12 = vpop.f32.mrf.mxu0 }
  0xc2   : > { %650 = vmatpush.bf16.msrb.mxu3 %v509_v53 }
  0xc6   : > { %651 = vmatpush.bf16.msrb.mxu3 %v508_v37  ;;  %v933_v37 = vld [vmem:[%s1391_s2 + $0x84] sm:$0xf]  ;;  %v416_v18 = vpop.f32.mrf.mxu0 }
  0xc8   : > { %618 = vmatmul.bf16.gmra.mxu2 %v509_v53  ;;  %v751_v53 = vunpack.c.l.b16 %v711_v38 }
  0xca   : > { %652 = vmatpush.bf16.msrb.mxu3 %v507_v32  ;;  %v714_v32 = vsel %vm1058_vm1, %v935_v30, 0 }
  0xcb   : > { %v754_v34 = vunpack.c.l.b16 %v714_v32 }
  0xcd   : > { %928 = vmatmul.msk.bf16.vlgmr.msrb.gmra.mxu3 %vm465_vm2, %v1159_v63  ;;  %v726_v63 = vsel %vm1058_vm1, %v947_v7, 0  ;;  %v768_v35 = vpack.c.b16 %v754_v34, %v753_v33 }
  0xce   : > { %v766_v41 = vunpack.c.l.b16 %v726_v63 }
  0xd8   : > { %623 = vmatmul.bf16.gmra.mxu2 %v510_v39  ;;  %v712_v39 = vsel %vm1058_vm1, %v933_v37, 0 }
  0xd9   : > { %v752_v3 = vunpack.c.l.b16 %v712_v39 }
  0xdb   : > { %v767_v7 = vpack.c.b16 %v752_v3, %v751_v53 }
  0xdd   : > { %929 = vmatmul.msk.bf16.gmra.mxu3 %vm465_vm2, %v1213_v47  ;;  %v764_v47 = vunpack.c.l.b16 %v724_v45 }
  0xed   : > { %930 = vmatmul.msk.bf16.gmra.mxu3 %vm465_vm2, %v1164_v8  ;;  %v774_v8 = vpack.c.b16 %v766_v41, %v765_v40 }
  0xef   : > { %783 = vmatpush.bf16.msrb.mxu1 %v774_v8 }
  0xfd   : > { %931 = vmatmul.msk.bf16.gmra.mxu3 %vm465_vm2, %v1218_v48  ;;  %v773_v48 = vpack.c.b16 %v764_v47, %v763_v46 }
  0xff   : > { %784 = vmatpush.bf16.msrb.mxu1 %v773_v48 }
 0x103   : > { %785 = vmatpush.bf16.msrb.mxu1 %v772_v56 }
 0x107   : > { %786 = vmatpush.bf16.msrb.mxu1 %v771_v9 }
 0x10b   : > { %787 = vmatpush.bf16.msrb.mxu1 %v770_v19 }
 0x10f   : > { %788 = vmatpush.bf16.msrb.mxu1 %v769_v27  ;;  %v419_v27 = vpop.f32.mrf.mxu0 }
 0x113   : > { %789 = vmatpush.bf16.msrb.mxu1 %v768_v35 }
 0x117   : > { %790 = vmatpush.bf16.msrb.mxu1 %v767_v7  ;;  %v421_v35 = vpop.f32.mrf.mxu0 }
 0x11f   : > { %v424_v3 = vpop.f32.mrf.mxu0 }
 0x12b   : > { %v609_v61 = vpop.f32.mrf.mxu2 }
 0x150   : > { %v654_v11 = vpop.f32.mrf.mxu3 }
 0x151   : > { %v674_v63 = vmul.f32 2.0, %v654_v11 }
 0x153   : > { %v682_v8 = vsub.f32 %v674_v63, %v1087_v22 }
 0x158   : > { %v656_v40 = vpop.f32.mrf.mxu3 }
 0x159   : > { %v675_v41 = vmul.f32 2.0, %v656_v40 }
 0x15b   : > { %v683_v42 = vsub.f32 %v675_v41, %v1102_v29 }
 0x15d   : > { %v690_v43 = vpack.c.bf16 %v683_v42, %v682_v8  ;;  %v426_v42 = vpop.f32.mrf.mxu0 }
 0x15f   : > { %791 = vmatmul.bf16.vlgmr.msrb.gmra.mxu1 %v690_v43 }
 0x160   : > { %v659_v13 = vpop.f32.mrf.mxu3 }
 0x161   : > { %v676_v44 = vmul.f32 2.0, %v659_v13 }
 0x163   : > { %v684_v46 = vsub.f32 %v676_v44, %v1041_v5 }
 0x168   : > { %v661_v45 = vpop.f32.mrf.mxu3 }
 0x169   : > { %v677_v10 = vmul.f32 2.0, %v661_v45 }
 0x16b   : > { %v685_v47 = vsub.f32 %v677_v10, %v1044_v6 }
 0x16d   : > { %v691_v48 = vpack.c.bf16 %v685_v47, %v684_v46 }
 0x16f   : > { %796 = vmatmul.bf16.gmra.mxu1 %v691_v48 }
 0x170   : > { %v664_v49 = vpop.f32.mrf.mxu3 }
 0x171   : > { %v678_v50 = vmul.f32 2.0, %v664_v49 }
 0x173   : > { %v686_v22 = vsub.f32 %v678_v50, %v1031_v2  ;;  %v970_v2 = vld [vmem:[%s1392_s3] ss:$0 sm:$0xff] }
 0x174   : > { %v429_v9 = vadd.f32 %v970_v2, %v409_v60  ;;  %v430_v16 = vadd.f32 %v970_v2, %v411_v62  ;;  %v431_v21 = vadd.f32 %v970_v2, %v414_v12  ;;  %v432_v28 = vadd.f32 %v970_v2, %v416_v18 }
 0x175   : > { %v433_v34 = vadd.f32 %v970_v2, %v419_v27  ;;  %v434_v53 = vadd.f32 %v970_v2, %v421_v35  ;;  %v435_v41 = vadd.f32 %v970_v2, %v424_v3  ;;  %v436_v44 = vadd.f32 %v970_v2, %v426_v42 }
 0x176   : > { %v629_v14 = vadd.f32 %v609_v61, %v429_v9 }
 0x178   : > { %v666_v51 = vpop.f32.mrf.mxu3 }
 0x179   : > { %v679_v52 = vmul.f32 2.0, %v666_v51 }
 0x17b   : > { %v687_v29 = vsub.f32 %v679_v52, %v1038_v4  ;;  %v611_v4 = vpop.f32.mrf.mxu2 }
 0x17c   : > { %v630_v17 = vadd.f32 %v611_v4, %v430_v16 }
 0x17d   : > { %v692_v54 = vpack.c.bf16 %v687_v29, %v686_v22 }
 0x17f   : > { %801 = vmatmul.bf16.gmra.mxu1 %v692_v54 }
 0x180   : > { %v669_v55 = vpop.f32.mrf.mxu3 }
 0x181   : > { %v680_v56 = vmul.f32 2.0, %v669_v55 }
 0x183   : > { %v688_v5 = vsub.f32 %v680_v56, %v1025_v0  ;;  %v614_v15 = vpop.f32.mrf.mxu2 }
 0x184   : > { %v631_v24 = vadd.f32 %v614_v15, %v431_v21 }
 0x188   : > { %v671_v57 = vpop.f32.mrf.mxu3 }
 0x189   : > { %v681_v58 = vmul.f32 2.0, %v671_v57 }
 0x18b   : > { %v689_v6 = vsub.f32 %v681_v58, %v1028_v1  ;;  %v616_v23 = vpop.f32.mrf.mxu2 }
 0x18c   : > { %v632_v31 = vadd.f32 %v616_v23, %v432_v28 }
 0x18d   : > { %v693_v59 = vpack.c.bf16 %v689_v6, %v688_v5 }
 0x18f   : > { %806 = vmatmul.bf16.gmra.mxu1 %v693_v59 }
 0x193   : > { %v619_v30 = vpop.f32.mrf.mxu2 }
 0x194   : > { %v633_v36 = vadd.f32 %v619_v30, %v433_v34 }
 0x19b   : > { %v621_v37 = vpop.f32.mrf.mxu2 }
 0x19c   : > { %v634_v7 = vadd.f32 %v621_v37, %v434_v53 }
 0x1a3   : > { %v624_v40 = vpop.f32.mrf.mxu2 }
 0x1a4   : > { %v635_v8 = vadd.f32 %v624_v40, %v435_v41 }
 0x1ab   : > { %v626_v45 = vpop.f32.mrf.mxu2 }
 0x1ac   : > { %v636_v10 = vadd.f32 %v626_v45, %v436_v44 }
 0x1dc   : > { %v792_v0 = vpop.f32.mrf.mxu1 }
 0x1dd   : > { %v812_v1 = vadd.f32 %v792_v0, %v629_v14 }
 0x1df   : > { %820 = vst [vmem:[%s1376_s11] sm:$0xff] %v812_v1 }
 0x1e4   : > { %v794_v19 = vpop.f32.mrf.mxu1 }
 0x1e5   : > { %v813_v20 = vadd.f32 %v794_v19, %v630_v17 }
 0x1e7   : > { %821 = vst [vmem:[%s1376_s11 + $0x8] sm:$0xff] %v813_v20 }
 0x1ec   : > { %v797_v25 = vpop.f32.mrf.mxu1 }
 0x1ed   : > { %v814_v26 = vadd.f32 %v797_v25, %v631_v24 }
 0x1ef   : > { %822 = vst [vmem:[%s1376_s11 + $0x10] sm:$0xff] %v814_v26 }
 0x1f4   : > { %v799_v32 = vpop.f32.mrf.mxu1 }
 0x1f5   : > { %v815_v33 = vadd.f32 %v799_v32, %v632_v31 }
 0x1f7   : > { %823 = vst [vmem:[%s1376_s11 + $0x18] sm:$0xff] %v815_v33 }
 0x1fc   : > { %v802_v38 = vpop.f32.mrf.mxu1 }
 0x1fd   : > { %v816_v39 = vadd.f32 %v802_v38, %v633_v36 }
 0x1ff   : > { %824 = vst [vmem:[%s1376_s11 + $0x20] sm:$0xff] %v816_v39 }
 0x204   : > { %v804_v11 = vpop.f32.mrf.mxu1 }
 0x205   : > { %v817_v63 = vadd.f32 %v804_v11, %v634_v7 }
 0x207   : > { %825 = vst [vmem:[%s1376_s11 + $0x28] sm:$0xff] %v817_v63 }
 0x20c   : > { %v807_v43 = vpop.f32.mrf.mxu1 }
 0x20d   : > { %v818_v13 = vadd.f32 %v807_v43, %v635_v8 }
 0x20f   : > { %826 = vst [vmem:[%s1376_s11 + $0x30] sm:$0xff] %v818_v13 }
 0x214   : > { %v809_v46 = vpop.f32.mrf.mxu1 }
 0x215   : > { %v819_v47 = vadd.f32 %v809_v46, %v636_v10 }
 0x217   : > { %827 = vst [vmem:[%s1376_s11 + $0x38] sm:$0xff] %v819_v47 }
 0x218 PF: > { %s14_s15 = sadd.s32 1, %s977_s15  }
 0x219   : > { %p11_p4 = scmp.ge.s32.totalorder %s14_s15, 4  }
 0x21b   :  { %13 = sbr.rel (!%p11_p4) target bundleno = 1 (0x1), region = 68 }

</bundles_post_ra>
